<compile_context>
chip_gen: v7x
topology: tpu7x:2x2x1
jax: 0.10.0
libtpu: 0.0.40
codegen_flags: <defaults>
</compile_context>

<pallas_src>
import functools

import jax
import jax.numpy as jnp
from jax.experimental import pallas as pl
from jax.experimental.pallas import tpu as pltpu


def _henon_fm_kernel(x_ref, w1_ref, bw_ref, out_ref, *, dim, reverse):
    """One (2*dim, TB) batch tile of the Henon map, feature-major.

    x_ref  : (2*dim, TB)  features on sublanes, batch on the 128-lane axis
    w1_ref : (width, dim) resident across grid steps
    bw_ref : (width, 2)   resident; column 0 = b1, column 1 = (+/- h) * w2
    out_ref: (2*dim, TB)
    """
    x = x_ref[...].astype(jnp.float32)              # (2*dim, TB)
    p = x[:dim, :]
    q = x[dim:, :]
    y = p if reverse else q                         # grad_H evaluation point

    w1 = w1_ref[...]                                # (width, dim), tiny
    b1 = bw_ref[:, 0:1]                             # (width, 1)
    w2h = bw_ref[:, 1:2]                            # (width, 1), +/-h folded in

    # z = W1 @ y + b1 via unrolled VPU broadcast-FMAs. The contraction dim is
    # `dim` (tiny), so the MXU would run at <4% utilization; the VPU path also
    # keeps the vector-extended / MRF-pop slots free.
    z = w1[:, 0:1] * y[0:1, :]
    for k in range(1, dim):
        z = z + w1[:, k:k + 1] * y[k:k + 1, :]
    z = z + b1                                      # (width, TB)

    t = jnp.tanh(z)                                 # EUP slot
    u = (1.0 - t * t) * w2h                         # (width, TB), scaled by +/-h

    # g = h * grad_H(y) = W1^T @ u, one output row at a time: lane-wise
    # multiply + sublane reduction (XLU). All ops are lane-local, so garbage
    # in OOB edge-block lanes never contaminates valid batch columns.
    g_rows = []
    for j in range(dim):
        g_rows.append(jnp.sum(u * w1[:, j:j + 1], axis=0, keepdims=True))
    g = jnp.concatenate(g_rows, axis=0)             # (dim, TB)

    if reverse:
        out_ref[:dim, :] = (g - q).astype(out_ref.dtype)    # p_new = -q + (-h)*grad_H(p)
        out_ref[dim:, :] = p.astype(out_ref.dtype)          # q_new = p
    else:
        out_ref[:dim, :] = q.astype(out_ref.dtype)          # p_new = q
        out_ref[dim:, :] = (g - p).astype(out_ref.dtype)    # q_new = -p + h*grad_H(q)


def _round_up(x, m):
    return ((x + m - 1) // m) * m


def _pick_tile(batch, block_b):
    """Lane-aligned batch tile; keep >= 2 grid steps so both v7x TCs get work."""
    if batch <= 128:
        return batch                     # single (partial-lane) tile for tiny batches
    block_b = max(128, (block_b // 128) * 128)
    return min(block_b, _round_up(pl.cdiv(batch, 2), 128))


def henon_layer_fm(x_fm, h, w1, b1, w2, *, reverse=False, block_b=16384):
    """Feature-major Henon layer: x_fm is (2*dim, B) -> (2*dim, B).

    No wrapper-side transpose / pad / cast: this is the entry point a
    feature-major layer stack should call so per-layer HBM traffic is only the
    kernel's own read + write.
    """
    two_dim, B = x_fm.shape
    dim = two_dim // 2
    width = w1.shape[0]

    w1_f = w1.astype(jnp.float32)
    hh = (-h[0]) if reverse else h[0]
    # Fold step size (grad term is linear in h) and b1 into one resident input.
    bw = jnp.concatenate(
        [b1.astype(jnp.float32).reshape(width, 1),
         (w2.astype(jnp.float32) * hh).reshape(width, 1)], axis=1)   # (width, 2)

    tb = _pick_tile(B, block_b)
    grid = (pl.cdiv(B, tb),)   # partial edge block allowed; OOB outputs dropped

    kernel = functools.partial(_henon_fm_kernel, dim=dim, reverse=reverse)

    return pl.pallas_call(
        kernel,
        out_shape=jax.ShapeDtypeStruct((two_dim, B), x_fm.dtype),
        grid_spec=pltpu.PrefetchScalarGridSpec(
            num_scalar_prefetch=0,
            grid=grid,
            in_specs=[
                pl.BlockSpec((two_dim, tb), lambda i: (0, i)),   # x tile (lane-dense)
                pl.BlockSpec((width, dim), lambda i: (0, 0)),    # W1 (resident)
                pl.BlockSpec((width, 2), lambda i: (0, 0)),      # [b1 | h*w2] (resident)
            ],
            out_specs=pl.BlockSpec((two_dim, tb), lambda i: (0, i)),
        ),
        compiler_params=pltpu.CompilerParams(
            dimension_semantics=("parallel",),
            vmem_limit_bytes=32 * 1024 * 1024,
        ),
    )(x_fm, w1_f, bw)


def henon_layer(x, h, w1, b1, w2, *, reverse=False, block_b=16384):
    """Batch-major entry point: x (B, 2*dim) -> (B, 2*dim).

    # TODO(synk): in a full strupnet stack keep activations feature-major
    # (2*dim, B) between layers (or fuse several H layers into one pallas_call
    # with all weights resident) so these boundary transposes are paid once per
    # model, not once per layer.
    """
    out_fm = henon_layer_fm(x.T, h, w1, b1, w2, reverse=reverse, block_b=block_b)
    return out_fm.T


def henon_reference(x, h, w1, b1, w2, *, reverse=False):
    dim = x.shape[-1] // 2
    p, q = x[:, :dim], x[:, dim:]
    hh = h[0]

    def grad_H(y):
        z = y @ w1.T + b1
        t = jnp.tanh(z)
        return ((1.0 - t * t) * w2) @ w1

    if reverse:
        hh = -hh
        p_new, q_new = -q + hh * grad_H(p), p
    else:
        p_new, q_new = q, -p + hh * grad_H(q)
    return jnp.concatenate([p_new, q_new], axis=-1)


if __name__ == "__main__":
    key = jax.random.PRNGKey(0)
    k_x, k_w1, k_b1, k_w2, k_x2 = jax.random.split(key, 5)

    B, dim, width = 8, 4, 32
    x = jax.random.normal(k_x, (B, 2 * dim), dtype=jnp.float32)
    h = jnp.array([0.1], dtype=jnp.float32)

    # Parameters shaped like nn.Linear(dim, width) / nn.Linear(width, 1, bias=False).
    w1 = jax.random.normal(k_w1, (width, dim), dtype=jnp.float32) * 0.3
    b1 = jax.random.normal(k_b1, (1, width), dtype=jnp.float32) * 0.1
    w2 = jax.random.normal(k_w2, (1, width), dtype=jnp.float32) * 0.3

    out_fwd = jax.block_until_ready(henon_layer(x, h, w1, b1, w2, reverse=False))
    out_rev = jax.block_until_ready(henon_layer(x, h, w1, b1, w2, reverse=True))
    ref_fwd = henon_reference(x, h, w1, b1, w2, reverse=False)
    ref_rev = henon_reference(x, h, w1, b1, w2, reverse=True)
    assert jnp.allclose(out_fwd, ref_fwd, atol=1e-5, rtol=1e-5)
    assert jnp.allclose(out_rev, ref_rev, atol=1e-5, rtol=1e-5)

    # Larger, non-tile-multiple batch: multi-step grid, partial edge block
    # (no explicit padding), resident weights across steps.
    B2 = 1000
    x2 = jax.random.normal(k_x2, (B2, 2 * dim), dtype=jnp.float32)
    out_big = jax.block_until_ready(
        henon_layer(x2, h, w1, b1, w2, reverse=False, block_b=256))
    ref_big = henon_reference(x2, h, w1, b1, w2, reverse=False)
    assert jnp.allclose(out_big, ref_big, atol=1e-5, rtol=1e-5)

    # Default (large) tile via the zero-copy feature-major entry point.
    out_big2 = jax.block_until_ready(
        henon_layer_fm(x2.T, h, w1, b1, w2, reverse=False))
    assert jnp.allclose(out_big2.T, ref_big, atol=1e-5, rtol=1e-5)

    print("KERNEL_OK")
</pallas_src>

<mosaic_0001>
module attributes {stable_mosaic.version = 11 : i64} {
  func.func @_henon_fm_kernel(%arg0: i32, %arg1: memref<8x8xf32, #tpu.memory_space<vmem>>, %arg2: memref<32x4xf32, #tpu.memory_space<vmem>>, %arg3: memref<32x2xf32, #tpu.memory_space<vmem>>, %arg4: memref<8x8xf32, #tpu.memory_space<vmem>>) attributes {dimension_semantics = [#tpu.dimension_semantics<parallel>], iteration_bounds = array<i64: 1>, scalar_prefetch = 0 : i64, scratch_operands = 0 : i64, tpu.core_type = #tpu.core_type<tc>, window_params = [{transform_indices = @transform_0, window_bounds = array<i64: 8, 8>}, {pipeline_mode = #tpu.pipeline_mode<synchronous>, transform_indices = @transform_1, window_bounds = array<i64: 32, 4>}, {pipeline_mode = #tpu.pipeline_mode<synchronous>, transform_indices = @transform_2, window_bounds = array<i64: 32, 2>}, {transform_indices = @transform_3, window_bounds = array<i64: 8, 8>}]} {
    %c0 = arith.constant 0 : index
    %c0_0 = arith.constant 0 : index
    %0 = vector.load %arg1[%c0, %c0_0] : memref<8x8xf32, #tpu.memory_space<vmem>>, vector<8x8xf32>
    %1 = vector.extract_strided_slice %0 {offsets = [0, 0], sizes = [4, 8], strides = [1, 1]} : vector<8x8xf32> to vector<4x8xf32>
    %2 = vector.extract_strided_slice %0 {offsets = [4, 0], sizes = [4, 8], strides = [1, 1]} : vector<8x8xf32> to vector<4x8xf32>
    %c0_1 = arith.constant 0 : index
    %c0_2 = arith.constant 0 : index
    %3 = vector.load %arg2[%c0_1, %c0_2] : memref<32x4xf32, #tpu.memory_space<vmem>>, vector<32x4xf32>
    %c0_3 = arith.constant 0 : index
    %c0_4 = arith.constant 0 : index
    %4 = vector.load %arg3[%c0_3, %c0_4] : memref<32x2xf32, #tpu.memory_space<vmem>>, vector<32x1xf32>
    %c0_5 = arith.constant 0 : index
    %c1 = arith.constant 1 : index
    %5 = vector.load %arg3[%c0_5, %c1] : memref<32x2xf32, #tpu.memory_space<vmem>>, vector<32x1xf32>
    %6 = vector.extract_strided_slice %3 {offsets = [0, 0], sizes = [32, 1], strides = [1, 1]} : vector<32x4xf32> to vector<32x1xf32>
    %7 = vector.extract_strided_slice %2 {offsets = [0, 0], sizes = [1, 8], strides = [1, 1]} : vector<4x8xf32> to vector<1x8xf32>
    %8 = vector.broadcast %6 : vector<32x1xf32> to vector<32x8xf32>
    %9 = vector.broadcast %7 : vector<1x8xf32> to vector<32x8xf32>
    %10 = arith.mulf %8, %9 : vector<32x8xf32>
    %11 = vector.extract_strided_slice %3 {offsets = [0, 1], sizes = [32, 1], strides = [1, 1]} : vector<32x4xf32> to vector<32x1xf32>
    %12 = vector.extract_strided_slice %2 {offsets = [1, 0], sizes = [1, 8], strides = [1, 1]} : vector<4x8xf32> to vector<1x8xf32>
    %13 = vector.broadcast %11 : vector<32x1xf32> to vector<32x8xf32>
    %14 = vector.broadcast %12 : vector<1x8xf32> to vector<32x8xf32>
    %15 = arith.mulf %13, %14 : vector<32x8xf32>
    %16 = arith.addf %10, %15 : vector<32x8xf32>
    %17 = vector.extract_strided_slice %3 {offsets = [0, 2], sizes = [32, 1], strides = [1, 1]} : vector<32x4xf32> to vector<32x1xf32>
    %18 = vector.extract_strided_slice %2 {offsets = [2, 0], sizes = [1, 8], strides = [1, 1]} : vector<4x8xf32> to vector<1x8xf32>
    %19 = vector.broadcast %17 : vector<32x1xf32> to vector<32x8xf32>
    %20 = vector.broadcast %18 : vector<1x8xf32> to vector<32x8xf32>
    %21 = arith.mulf %19, %20 : vector<32x8xf32>
    %22 = arith.addf %16, %21 : vector<32x8xf32>
    %23 = vector.extract_strided_slice %3 {offsets = [0, 3], sizes = [32, 1], strides = [1, 1]} : vector<32x4xf32> to vector<32x1xf32>
    %24 = vector.extract_strided_slice %2 {offsets = [3, 0], sizes = [1, 8], strides = [1, 1]} : vector<4x8xf32> to vector<1x8xf32>
    %25 = vector.broadcast %23 : vector<32x1xf32> to vector<32x8xf32>
    %26 = vector.broadcast %24 : vector<1x8xf32> to vector<32x8xf32>
    %27 = arith.mulf %25, %26 : vector<32x8xf32>
    %28 = arith.addf %22, %27 : vector<32x8xf32>
    %29 = vector.broadcast %4 : vector<32x1xf32> to vector<32x8xf32>
    %30 = arith.addf %28, %29 : vector<32x8xf32>
    %31 = math.tanh %30 : vector<32x8xf32>
    %32 = arith.mulf %31, %31 : vector<32x8xf32>
    %cst = arith.constant 1.000000e+00 : f32
    %33 = vector.broadcast %cst : f32 to vector<32x8xf32>
    %34 = arith.subf %33, %32 : vector<32x8xf32>
    %35 = vector.broadcast %5 : vector<32x1xf32> to vector<32x8xf32>
    %36 = arith.mulf %34, %35 : vector<32x8xf32>
    %37 = vector.extract_strided_slice %3 {offsets = [0, 0], sizes = [32, 1], strides = [1, 1]} : vector<32x4xf32> to vector<32x1xf32>
    %38 = vector.broadcast %37 : vector<32x1xf32> to vector<32x8xf32>
    %39 = arith.mulf %36, %38 : vector<32x8xf32>
    %cst_6 = arith.constant dense<0.000000e+00> : vector<8xf32>
    %40 = vector.multi_reduction <add>, %39, %cst_6 [0] : vector<32x8xf32> to vector<8xf32>
    %41 = vector.shape_cast %40 : vector<8xf32> to vector<1x8xf32>
    %42 = vector.extract_strided_slice %3 {offsets = [0, 1], sizes = [32, 1], strides = [1, 1]} : vector<32x4xf32> to vector<32x1xf32>
    %43 = vector.broadcast %42 : vector<32x1xf32> to vector<32x8xf32>
    %44 = arith.mulf %36, %43 : vector<32x8xf32>
    %cst_7 = arith.constant dense<0.000000e+00> : vector<8xf32>
    %45 = vector.multi_reduction <add>, %44, %cst_7 [0] : vector<32x8xf32> to vector<8xf32>
    %46 = vector.shape_cast %45 : vector<8xf32> to vector<1x8xf32>
    %47 = vector.extract_strided_slice %3 {offsets = [0, 2], sizes = [32, 1], strides = [1, 1]} : vector<32x4xf32> to vector<32x1xf32>
    %48 = vector.broadcast %47 : vector<32x1xf32> to vector<32x8xf32>
    %49 = arith.mulf %36, %48 : vector<32x8xf32>
    %cst_8 = arith.constant dense<0.000000e+00> : vector<8xf32>
    %50 = vector.multi_reduction <add>, %49, %cst_8 [0] : vector<32x8xf32> to vector<8xf32>
    %51 = vector.shape_cast %50 : vector<8xf32> to vector<1x8xf32>
    %52 = vector.extract_strided_slice %3 {offsets = [0, 3], sizes = [32, 1], strides = [1, 1]} : vector<32x4xf32> to vector<32x1xf32>
    %53 = vector.broadcast %52 : vector<32x1xf32> to vector<32x8xf32>
    %54 = arith.mulf %36, %53 : vector<32x8xf32>
    %cst_9 = arith.constant dense<0.000000e+00> : vector<8xf32>
    %55 = vector.multi_reduction <add>, %54, %cst_9 [0] : vector<32x8xf32> to vector<8xf32>
    %56 = vector.shape_cast %55 : vector<8xf32> to vector<1x8xf32>
    %57 = tpu.concatenate %41, %46, %51, %56 in 0 : vector<1x8xf32>, vector<1x8xf32>, vector<1x8xf32>, vector<1x8xf32> -> vector<4x8xf32>
    %c0_10 = arith.constant 0 : index
    %c0_11 = arith.constant 0 : index
    %58 = vector.load %arg4[%c0_10, %c0_11] : memref<8x8xf32, #tpu.memory_space<vmem>>, vector<4x8xf32>
    tpu.vector_store %arg4[%c0_10, %c0_11], %2 {strides = array<i32>} : memref<8x8xf32, #tpu.memory_space<vmem>>, vector<4x8xf32>,
    %59 = arith.subf %57, %1 : vector<4x8xf32>
    %c4 = arith.constant 4 : index
    %c0_12 = arith.constant 0 : index
    %60 = vector.load %arg4[%c4, %c0_12] : memref<8x8xf32, #tpu.memory_space<vmem>>, vector<4x8xf32>
    tpu.vector_store %arg4[%c4, %c0_12], %59 {strides = array<i32>} : memref<8x8xf32, #tpu.memory_space<vmem>>, vector<4x8xf32>,
    return
  }
  func.func @transform_0(%arg0: i32) -> (i32, i32) {
    %c0_i32 = arith.constant 0 : i32
    %c0_i32_0 = arith.constant 0 : i32
    return %c0_i32, %arg0 : i32, i32
  }
  func.func @transform_1(%arg0: i32) -> (i32, i32) {
    %c0_i32 = arith.constant 0 : i32
    %c0_i32_0 = arith.constant 0 : i32
    %c0_i32_1 = arith.constant 0 : i32
    return %c0_i32, %c0_i32_0 : i32, i32
  }
  func.func @transform_2(%arg0: i32) -> (i32, i32) {
    %c0_i32 = arith.constant 0 : i32
    %c0_i32_0 = arith.constant 0 : i32
    %c0_i32_1 = arith.constant 0 : i32
    return %c0_i32, %c0_i32_0 : i32, i32
  }
  func.func @transform_3(%arg0: i32) -> (i32, i32) {
    %c0_i32 = arith.constant 0 : i32
    %c0_i32_0 = arith.constant 0 : i32
    return %c0_i32, %arg0 : i32, i32
  }
}

</mosaic_0001>

<bundles_post_ra>
// kernel: tpu_custom_call.1
= control target key start
LH: loop header
LB: loop body
LE: loop exit
PB: predicated region body
PF: predicated region fallthrough
CT: control target
= control target key end

     0   :  { %v338_v1 = vmov 1   ;;  %v339_v2 = vmov 0   ;;  %s482_s0 = inlined_call_operand.vmem [shape: f32[8,8], index: 0, kind: input, shape index: {}]   ;;  %s483_s1 = inlined_call_operand.vmem [shape: f32[32,4], index: 1, kind: input, shape index: {}]   ;;  %s484_s2 = inlined_call_operand.vmem [shape: f32[32,2], index: 2, kind: input, shape index: {}]   ;;  %s485_s3 = inlined_call_operand.hbm [shape: f32[8,8], index: 3, kind: output, shape index: {}]  }
   0x1   :  { %v16_v0 = vld [vmem:[%s483_s1] sm:$0xff]  ;;  %292 = vset.pattern.permute.xlu1 %v338_v1  ;;  %291 = vset.pattern.permute.xlu0 %v339_v2  ;;  %v17_v3 = vld [vmem:[%s483_s1 + $0x8] sm:$0xff] }
   0x2   :  { %53 = vperm.xlu1 %292, %v16_v0   ;;  %26 = vperm.xlu0 %291, %v16_v0  }
   0x3   :  { %8 = vsyncpa [#allocation3], 0  ;;  %v18_v4 = vld [vmem:[%s483_s1 + $0x10] sm:$0xff]  ;;  %v340_v5 = vmov 2   ;;  %v19_v6 = vld [vmem:[%s483_s1 + $0x18] sm:$0xff]  ;;  %v341_v7 = vmov 3   ;;  %v44_v19 = vlaneseq }
   0x4   :  { %v21_v8 = vld [vmem:[%s484_s2 + $0x8] sm:$0xff]  ;;  %v20_v9 = vld [vmem:[%s484_s2] sm:$0xff]  ;;  %v23_v10 = vld [vmem:[%s484_s2 + $0x18] sm:$0xff]  ;;  %vm267_vm0 = vcmask 64516   ;;  %vm196_vm1 = vcmask 64512   ;;  %vm261_vm2 = vcmask 1040384  }
   0x5   :  { %v22_v11 = vld [vmem:[%s484_s2 + $0x10] sm:$0xff]  ;;  %v390_v12 = vld [vmem:[%s482_s0] sm:$0xff]  ;;  %v45_v22 = vshrl.u32 %v44_v19, 7  ;;  %vm263_vm3 = vcmask 1041408   ;;  %vm265_vm4 = vcmask 1042432   ;;  %s342_s0 = smov [#allocation2]  }
   0x6   :  { %57 = vperm.xlu1 %292, %v17_v3   ;;  %31 = vperm.xlu0 %291, %v17_v3   ;;  %268 = vst.msk [vmem:[#allocation2 - $0x4] sm:$0xf0] %vm267_vm0, %v390_v12  ;;  %s278_s2 = sshll.u32 %s342_s0, 4  ;;  %vm270_vm5 = vcmask 60416   ;;  %s279_s2 = int_to_ptr.vmem [resolvable:$true] %s278_s2 }
   0x7   :  { %v70_v25 = vsub.s32 5, %v45_v22  ;;  %v46_v26 = vsub.s32 4, %v45_v22  ;;  %v98_v27 = vsub.s32 6, %v45_v22  ;;  %v126_v29 = vsub.s32 7, %v45_v22  ;;  %s314_s29 = scalar_lea.vmem %s279_s2, 128  ;;  %p319_p1 = scmp.lt.s32.totalorder %s279_s2, %s279_s2 }
   0x8   :  { %p315_p0 = scmp.ne.s32.totalorder %s279_s2, %s314_s29  ;;  %p320_p2 = scmp.lt.s32.totalorder %s314_s29, %s314_s29 }
   0x9   :  { %v71_v31 = vrot.slane %v390_v12, %v70_v25  ;;  %v47_v32 = vrot.slane %v390_v12, %v46_v26  ;;  %v99_v33 = vrot.slane %v390_v12, %v98_v27  ;;  %v127_v36 = vrot.slane %v390_v12, %v126_v29 }
   0xa   :  { %61 = vperm.xlu1 %292, %v18_v4   ;;  %36 = vperm.xlu0 %291, %v18_v4   ;;  %p321_p3 = por %p320_p2, %p319_p1 }
   0xc   :  { %p322_p4 = pnand %p321_p3, %p315_p0 }
   0xe   :  { %294 = vset.pattern.permute.xlu1 %v340_v5  ;;  %293 = vset.pattern.permute.xlu0 %v340_v5 }
   0xf   :  { %85 = vperm.xlu1 %294, %v17_v3   ;;  %81 = vperm.xlu0 %293, %v16_v0  }
  0x13   :  { %295 = vset.pattern.permute.xlu1 %v339_v2  ;;  %296 = vset.pattern.permute.xlu0 %v338_v1 }
  0x14   :  { %41 = vperm.xlu1 %295, %v19_v6   ;;  %65 = vperm.xlu0 %296, %v19_v6  }
  0x18   :  { %297 = vset.pattern.permute.xlu1 %v340_v5  ;;  %299 = vset.pattern.permute.xlu0 %v341_v7 }
  0x19   :  { %89 = vperm.xlu1 %297, %v18_v4   ;;  %113 = vperm.xlu0 %299, %v17_v3  }
  0x1d   :  { %298 = vset.pattern.permute.xlu1 %v341_v7  ;;  %121 = vperm.xlu0 %299, %v19_v6  }
  0x1e   :  { %109 = vperm.xlu1 %298, %v16_v0  }
  0x21   :  { %303 = vset.pattern.permute.xlu0 %v339_v2 }
  0x22   :  { %300 = vset.pattern.permute.xlu1 %v340_v5  ;;  %143 = vperm.xlu0 %303, %v21_v8  }
  0x23   :  { %93 = vperm.xlu1 %300, %v19_v6  }
  0x26   :  { %304 = vset.pattern.permute.xlu0 %v338_v1 }
  0x27   :  { %301 = vset.pattern.permute.xlu1 %v341_v7  ;;  %173 = vperm.xlu0 %304, %v20_v9  }
  0x28   :  { %117 = vperm.xlu1 %301, %v18_v4  }
  0x2b   :  { %185 = vperm.xlu0 %304, %v23_v10  }
  0x2c   :  { %302 = vset.pattern.permute.xlu1 %v339_v2 }
  0x2d   :  { %138 = vperm.xlu1 %302, %v20_v9  }
  0x31   :  { %148 = vperm.xlu1 %302, %v22_v11  }
  0x35   :  { %153 = vperm.xlu1 %302, %v23_v10  }
  0x39   :  { %305 = vset.pattern.permute.xlu1 %v338_v1 }
  0x3a   :  { %177 = vperm.xlu1 %305, %v21_v8  }
  0x3e   :  { %181 = vperm.xlu1 %305, %v22_v11  }
  0x81   :  { %v393_v13 = vpop.permute.xlu1 %53  ;;  %v395_v14 = vpop.permute.xlu0 %26 }
  0x82   :  { %v72_v44 = vmul.f32 %v71_v31, %v393_v13  ;;  %v48_v45 = vmul.f32 %v47_v32, %v395_v14 }
  0x84   :  { %v76_v50 = vadd.f32 %v72_v44, %v48_v45 }
  0x85   :  { %v397_v15 = vpop.permute.xlu1 %57  ;;  %v399_v16 = vpop.permute.xlu0 %31 }
  0x86   :  { %v73_v34 = vmul.f32 %v71_v31, %v397_v15  ;;  %v49_v35 = vmul.f32 %v47_v32, %v399_v16 }
  0x88   :  { %v77_v40 = vadd.f32 %v73_v34, %v49_v35 }
  0x89   :  { %v401_v17 = vpop.permute.xlu1 %61  ;;  %v403_v18 = vpop.permute.xlu0 %36 }
  0x8a   :  { %v74_v51 = vmul.f32 %v71_v31, %v401_v17  ;;  %v50_v52 = vmul.f32 %v47_v32, %v403_v18 }
  0x8c   :  { %v78_v59 = vadd.f32 %v74_v51, %v50_v52 }
  0x8e   :  { %v405_v20 = vpop.permute.xlu1 %85  ;;  %v407_v21 = vpop.permute.xlu0 %81 }
  0x8f   :  { %v101_v39 = vmul.f32 %v99_v33, %v405_v20  ;;  %v100_v48 = vmul.f32 %v99_v33, %v407_v21 }
  0x91   :  { %v105_v42 = vadd.f32 %v101_v39, %v77_v40  ;;  %v104_v55 = vadd.f32 %v100_v48, %v76_v50 }
  0x93   :  { %v409_v23 = vpop.permute.xlu1 %41  ;;  %v411_v24 = vpop.permute.xlu0 %65 }
  0x94   :  { %v51_v56 = vmul.f32 %v47_v32, %v409_v23  ;;  %v75_v57 = vmul.f32 %v71_v31, %v411_v24 }
  0x96   :  { %v79_v0 = vadd.f32 %v75_v57, %v51_v56 }
  0x98   :  { %v413_v28 = vpop.permute.xlu1 %89  ;;  %v415_v30 = vpop.permute.xlu0 %113 }
  0x99   :  { %v129_v41 = vmul.f32 %v127_v36, %v415_v30  ;;  %v102_v58 = vmul.f32 %v99_v33, %v413_v28 }
  0x9b   :  { %v133_v47 = vadd.f32 %v129_v41, %v105_v42  ;;  %v106_v1 = vadd.f32 %v102_v58, %v78_v59 }
  0x9c   :  { %v423_v38 = vpop.permute.xlu0 %121 }
  0x9d   :  { %v110_v37 = vpop.permute.xlu1 %109  ;;  %v131_v3 = vmul.f32 %v127_v36, %v423_v38 }
  0x9e   :  { %v128_v53 = vmul.f32 %v127_v36, %v110_v37 }
  0xa0   :  { %v132_v62 = vadd.f32 %v128_v53, %v104_v55 }
  0xa1   :  { %v144_v46 = vpop.permute.xlu0 %143 }
  0xa2   :  { %v427_v43 = vpop.permute.xlu1 %93  ;;  %v157_v49 = vadd.f32 %v144_v46, %v133_v47 }
  0xa3   :  { %v103_v60 = vmul.f32 %v99_v33, %v427_v43 }
  0xa4   :  { %306 = vtanh.f32 %v157_v49 }
  0xa5   :  { %v107_v4 = vadd.f32 %v103_v60, %v79_v0 }
  0xa6   :  { %v174_v29 = vpop.permute.xlu0 %173 }
  0xa7   :  { %v118_v54 = vpop.permute.xlu1 %117  ;;  %v135_v8 = vadd.f32 %v131_v3, %v107_v4 }
  0xa8   :  { %v130_v61 = vmul.f32 %v127_v36, %v118_v54 }
  0xaa   :  { %v134_v5 = vadd.f32 %v130_v61, %v106_v1  ;;  %v186_v55 = vpop.permute.xlu0 %185 }
  0xac   :  { %v139_v63 = vpop.permute.xlu1 %138 }
  0xad   :  { %v156_v2 = vadd.f32 %v139_v63, %v132_v62 }
  0xae   :  { %v307_v9 = vpop.eup %306 }
  0xaf   :  { %308 = vtanh.f32 %v156_v2  ;;  %v165_v19 = vmul.f32 %v307_v9, %v307_v9 }
  0xb0   :  { %v149_v6 = vpop.permute.xlu1 %148 }
  0xb1   :  { %v158_v7 = vadd.f32 %v149_v6, %v134_v5  ;;  %v169_v27 = vsub.f32 1.0, %v165_v19 }
  0xb3   :  { %310 = vtanh.f32 %v158_v7 }
  0xb4   :  { %v154_v10 = vpop.permute.xlu1 %153 }
  0xb5   :  { %v159_v11 = vadd.f32 %v154_v10, %v135_v8 }
  0xb7   :  { %312 = vtanh.f32 %v159_v11 }
  0xb9   :  { %v309_v22 = vpop.eup %308  ;;  %v178_v25 = vpop.permute.xlu1 %177 }
  0xba   :  { %v164_v26 = vmul.f32 %v309_v22, %v309_v22  ;;  %v189_v32 = vmul.f32 %v178_v25, %v169_v27 }
  0xbc   :  { %v168_v33 = vsub.f32 1.0, %v164_v26  ;;  %v193_v39 = vmul.f32 %v189_v32, %v399_v16  ;;  %v211_v47 = vmul.f32 %v189_v32, %v397_v15  ;;  %v228_v48 = vmul.f32 %v189_v32, %v405_v20 }
  0xbd   :  { %v311_v31 = vpop.eup %310  ;;  %v245_v49 = vmul.f32 %v189_v32, %v415_v30  ;;  %v182_v50 = vpop.permute.xlu1 %181 }
  0xbe   :  { %v188_v34 = vmul.f32 %v174_v29, %v168_v33  ;;  %v166_v35 = vmul.f32 %v311_v31, %v311_v31  ;;  %v198_v51 = vsel %vm196_vm1, %v193_v39, 0.0  ;;  %v215_v56 = vsel %vm196_vm1, %v211_v47, 0.0 }
  0xbf   :  { %v232_v57 = vsel %vm196_vm1, %v228_v48, 0.0  ;;  %v249_v58 = vsel %vm196_vm1, %v245_v49, 0.0 }
  0xc0   :  { %v192_v40 = vmul.f32 %v188_v34, %v395_v14  ;;  %v210_v41 = vmul.f32 %v188_v34, %v393_v13  ;;  %v227_v42 = vmul.f32 %v188_v34, %v407_v21  ;;  %v244_v44 = vmul.f32 %v188_v34, %v110_v37 }
  0xc1   :  { %v313_v36 = vpop.eup %312  ;;  %v170_v45 = vsub.f32 1.0, %v166_v35 }
  0xc2   :  { %v167_v46 = vmul.f32 %v313_v36, %v313_v36  ;;  %v197_v14 = vsel %vm196_vm1, %v192_v40, 0.0  ;;  %v214_v13 = vsel %vm196_vm1, %v210_v41, 0.0  ;;  %v231_v21 = vsel %vm196_vm1, %v227_v42, 0.0 }
  0xc3   :  { %v190_v52 = vmul.f32 %v182_v50, %v170_v45  ;;  %v248_v37 = vsel %vm196_vm1, %v244_v44, 0.0  ;;  %v216_v63 = vadd.f32 %v215_v56, %v214_v13 }
  0xc4   :  { %v171_v16 = vsub.f32 1.0, %v167_v46 }
  0xc5   :  { %v194_v53 = vmul.f32 %v190_v52, %v403_v18  ;;  %v212_v15 = vmul.f32 %v190_v52, %v401_v17  ;;  %v229_v20 = vmul.f32 %v190_v52, %v413_v28  ;;  %v246_v30 = vmul.f32 %v190_v52, %v118_v54 }
  0xc6   :  { %v191_v59 = vmul.f32 %v186_v55, %v171_v16  ;;  %v199_v17 = vadd.f32 %v198_v51, %v197_v14  ;;  %v233_v28 = vadd.f32 %v232_v57, %v231_v21  ;;  %v250_v54 = vadd.f32 %v249_v58, %v248_v37 }
  0xc7   :  { %v200_v60 = vsel %vm196_vm1, %v194_v53, 0.0  ;;  %v217_v61 = vsel %vm196_vm1, %v212_v15, 0.0  ;;  %v234_v62 = vsel %vm196_vm1, %v229_v20, 0.0  ;;  %v251_v18 = vsel %vm196_vm1, %v246_v30, 0.0 }
  0xc8   :  { %v195_v0 = vmul.f32 %v191_v59, %v409_v23  ;;  %v213_v1 = vmul.f32 %v191_v59, %v411_v24  ;;  %v230_v2 = vmul.f32 %v191_v59, %v427_v43  ;;  %v247_v3 = vmul.f32 %v191_v59, %v423_v38 }
  0xc9   :  { %v201_v4 = vadd.f32 %v200_v60, %v199_v17  ;;  %v218_v5 = vadd.f32 %v217_v61, %v216_v63  ;;  %v235_v6 = vadd.f32 %v234_v62, %v233_v28  ;;  %v252_v7 = vadd.f32 %v251_v18, %v250_v54 }
  0xca   :  { %v202_v8 = vsel %vm196_vm1, %v195_v0, 0.0  ;;  %v219_v9 = vsel %vm196_vm1, %v213_v1, 0.0  ;;  %v236_v10 = vsel %vm196_vm1, %v230_v2, 0.0  ;;  %v253_v11 = vsel %vm196_vm1, %v247_v3, 0.0 }
  0xcb   :  { %v203_v19 = vadd.f32 %v202_v8, %v201_v4  ;;  %v220_v23 = vadd.f32 %v219_v9, %v218_v5  ;;  %v237_v22 = vadd.f32 %v236_v10, %v235_v6  ;;  %v254_v24 = vadd.f32 %v253_v11, %v252_v7 }
  0xcd   :  { %v204_v25 = vrot.slane %v203_v19, 4  ;;  %v221_v43 = vrot.slane %v220_v23, 4  ;;  %v238_v26 = vrot.slane %v237_v22, 4  ;;  %v255_v38 = vrot.slane %v254_v24, 4 }
  0xcf   :  { %v205_v27 = vadd.f32 %v204_v25, %v203_v19  ;;  %v222_v29 = vadd.f32 %v221_v43, %v220_v23  ;;  %v239_v31 = vadd.f32 %v238_v26, %v237_v22  ;;  %v256_v32 = vadd.f32 %v255_v38, %v254_v24 }
  0xd1   :  { %v206_v33 = vrot.slane %v205_v27, 2  ;;  %v223_v34 = vrot.slane %v222_v29, 2  ;;  %v240_v35 = vrot.slane %v239_v31, 2  ;;  %v257_v36 = vrot.slane %v256_v32, 2 }
  0xd3   :  { %v207_v39 = vadd.f32 %v206_v33, %v205_v27  ;;  %v224_v40 = vadd.f32 %v223_v34, %v222_v29  ;;  %v241_v41 = vadd.f32 %v240_v35, %v239_v31  ;;  %v258_v42 = vadd.f32 %v257_v36, %v256_v32 }
  0xd5   :  { %v208_v44 = vrot.slane %v207_v39, 1  ;;  %v225_v45 = vrot.slane %v224_v40, 1  ;;  %v242_v46 = vrot.slane %v241_v41, 1  ;;  %v259_v47 = vrot.slane %v258_v42, 1 }
  0xd7   :  { %v209_v48 = vadd.f32 %v208_v44, %v207_v39  ;;  %v226_v49 = vadd.f32 %v225_v45, %v224_v40  ;;  %v243_v50 = vadd.f32 %v242_v46, %v241_v41  ;;  %v260_v51 = vadd.f32 %v259_v47, %v258_v42 }
  0xd9   :  { %v262_v52 = vsel %vm261_vm2, %v209_v48, %v226_v49 }
  0xda   :  { %v264_v16 = vsel %vm263_vm3, %v262_v52, %v243_v50 }
  0xdb   :  { %v266_v14 = vsel %vm265_vm4, %v264_v16, %v260_v51 }
  0xdc   :  { %v269_v13 = vsub.f32 %v266_v14, %v390_v12 }
  0xde   :  { %271 = vst.msk [vmem:[#allocation2 + $0x4] sm:$0xf] %vm270_vm5, %v269_v13 }
  0xdf   :  { %325 = shalt.err (!%p322_p4)
}
  0xe0   :  { %s326_s5 = scalar_lea.hbm %s485_s3, 128 }
  0xe1   :  { %p327_p5 = scmp.ne.s32.totalorder %s485_s3, %s326_s5  ;;  %p330_p6 = scmp.lt.u32.totalorder %s326_s5, %s485_s3 }
  0xe3   :  { %p332_p7 = pnand %p330_p6, %p327_p5 }
  0xe5   :  { %335 = shalt.err (!%p332_p7)
}
  0xe6   :  { %281 = dma.vmem_to_hbm [thread:$0]  %s279_s2, 128, %s485_s3, [#allocation3]  }
  0xe7   :  { %336 = dma.done.wait [#allocation3], 128  }
  0xe8   :  { %337 = vsyncadd [#allocation3], 4294967168 }
  0xe9   :  { %285 = vsyncpa [#allocation3], 1 }

</bundles_post_ra>
